<compile_context>
chip_gen: v7x
topology: tpu7x:2x2x1
jax: 0.10.0
libtpu: 0.0.40
codegen_flags: <defaults>
</compile_context>

<pallas_src>
import functools

import jax
import jax.numpy as jnp
from jax.experimental import pallas as pl
from jax.experimental.pallas import tpu as pltpu


NEG_SLOPE = 0.2
_VMEM_LIMIT = 32 * 1024 * 1024  # explicit; safe on v5e/v6e/v7x


def _mask_fill(dtype):
    # dtype-safe "very negative" fill (stays finite under max-subtraction).
    return float(jnp.finfo(dtype).min) * 0.5


def _choose_tile(n, preferred, quantum):
    """Largest tile <= preferred that divides n and is a multiple of `quantum`
    (falls back to the full extent for small / awkward n)."""
    if n <= preferred:
        return n
    t = (preferred // quantum) * quantum
    while t >= quantum:
        if n % t == 0:
            return t
        t -= quantum
    return n


# --------------------- stage 1: projection + scores --------------------------
def gat_project_kernel(x_ref, w_ref, att_ref, xp_ref, scores_ref):
    # xp = x @ W on the MXU.
    xp = jnp.dot(x_ref[...], w_ref[...], preferred_element_type=jnp.float32)
    xp_ref[...] = xp.astype(xp_ref.dtype)
    # One MXU matmul against the block-diagonal [H*C, 2H] attention matrix
    # yields all per-head <xp, att_src> and <xp, att_dst> scores at once
    # (scores[:, :H] = a_src, scores[:, H:] = a_dst).
    scores_ref[...] = jnp.dot(
        xp, att_ref[...], preferred_element_type=jnp.float32
    ).astype(scores_ref.dtype)


# ------------------ stage 2: online masked softmax + aggregate ---------------
def gat_attn_kernel(a_dst_ref, a_srcT_ref, xp_src_ref, adj_ref, bias_ref,
                    out_ref, m_ref, l_ref, acc_ref,
                    *, heads, head_dim, concat, negative_slope):
    j = pl.program_id(1)
    fill = _mask_fill(jnp.float32)

    @pl.when(j == 0)
    def _init():
        m_ref[...] = jnp.full_like(m_ref, fill)
        l_ref[...] = jnp.zeros_like(l_ref)
        acc_ref[...] = jnp.zeros_like(acc_ref)

    # Hoist the mask once per block; reused by every head.
    mask = adj_ref[...] > 0.0                  # [td, ts] bool
    a_dst = a_dst_ref[...]                     # [td, H]
    a_srcT = a_srcT_ref[...]                   # [H, ts]
    xp_s = xp_src_ref[...]                     # [ts, H*C]

    # TODO(synk): for large head counts fold this unrolled Python loop into a
    # lax.fori_loop(unroll=True) or an extra grid axis to bound live ranges.
    for h in range(heads):
        lo, hi = h * head_dim, (h + 1) * head_dim

        # e[i, j] = LeakyReLU(a_dst[i, h] + a_src[j, h])
        e = a_dst[:, h:h + 1] + a_srcT[h:h + 1, :]        # [td, ts]
        e = jnp.where(e > 0, e, negative_slope * e)
        e = jnp.where(mask, e, fill)

        # Online (flash-style) masked softmax update for this src block.
        m_old = m_ref[:, h:h + 1]                          # [td, 1]
        m_new = jnp.maximum(m_old, jnp.max(e, axis=-1, keepdims=True))
        p = jnp.exp(e - m_new)
        # Required for dst rows with no edge into THIS src block
        # (there e == fill == m_new so exp() == 1, which must be zeroed).
        p = jnp.where(mask, p, 0.0)
        scale = jnp.exp(m_old - m_new)                     # [td, 1]

        l_ref[:, h:h + 1] = scale * l_ref[:, h:h + 1] + jnp.sum(
            p, axis=-1, keepdims=True)
        acc_ref[:, lo:hi] = scale * acc_ref[:, lo:hi] + jnp.dot(
            p, xp_s[:, lo:hi], preferred_element_type=jnp.float32)
        m_ref[:, h:h + 1] = m_new

    @pl.when(j == pl.num_programs(1) - 1)
    def _finalize():
        # Normalization divide moved to the EUP slot.
        inv_l = pl.reciprocal(l_ref[...], approx=True)     # [td, H]
        acc = acc_ref[...]
        pieces = [acc[:, h * head_dim:(h + 1) * head_dim] * inv_l[:, h:h + 1]
                  for h in range(heads)]
        if concat:
            out = jnp.concatenate(pieces, axis=-1) + bias_ref[...]
        else:
            out = sum(pieces) * (1.0 / heads) + bias_ref[...]
        # Single lane-dense store of the full output tile.
        out_ref[...] = out.astype(out_ref.dtype)


# ------------------------------ wrapper ---------------------------------------
def gat_conv_pallas(x, adj, w, att_src, att_dst, bias, *, heads, concat,
                    tile_dst=256, tile_src=512):
    n, f_in = x.shape
    head_dim = att_src.shape[1]
    hc = heads * head_dim
    out_dim = hc if concat else head_dim

    # Block-diagonal [H*C, 2H] attention matrix: column h holds att_src[h] in
    # rows h*C:(h+1)*C, column H+h holds att_dst[h] likewise.
    att_mat = jnp.zeros((hc, 2 * heads), jnp.float32)
    for h in range(heads):
        att_mat = att_mat.at[h * head_dim:(h + 1) * head_dim, h].set(att_src[h])
        att_mat = att_mat.at[h * head_dim:(h + 1) * head_dim, heads + h].set(att_dst[h])

    # ---- stage 1: projection + scores, tiled over node rows -----------------
    tn = _choose_tile(n, 512, 128)
    xp, scores = pl.pallas_call(
        gat_project_kernel,
        grid=(n // tn,),
        in_specs=[pl.BlockSpec((tn, f_in), lambda i: (i, 0)),
                  pl.BlockSpec((f_in, hc), lambda i: (0, 0)),
                  pl.BlockSpec((hc, 2 * heads), lambda i: (0, 0))],
        out_specs=[pl.BlockSpec((tn, hc), lambda i: (i, 0)),
                   pl.BlockSpec((tn, 2 * heads), lambda i: (i, 0))],
        out_shape=[jax.ShapeDtypeStruct((n, hc), jnp.float32),
                   jax.ShapeDtypeStruct((n, 2 * heads), jnp.float32)],
        compiler_params=pltpu.CompilerParams(
            dimension_semantics=("parallel",),
            vmem_limit_bytes=_VMEM_LIMIT),
    )(x, w, att_mat)

    # Tiny [N,H]->[H,N] relayout done once in XLA (keeps all cross-lane traffic
    # out of the streamed attention inner loop).
    a_dst = scores[:, heads:]
    a_srcT = jnp.transpose(scores[:, :heads])

    # ---- stage 2: tiled attention with online masked softmax ----------------
    td = _choose_tile(n, tile_dst, 8)     # dst rows per block (sublane axis)
    ts = _choose_tile(n, tile_src, 128)   # src cols per block (lane axis)
    bias2d = bias.reshape(1, out_dim).astype(jnp.float32)
    grid = (n // td, n // ts)

    cost = pl.CostEstimate(
        flops=int(2 * n * n * heads * head_dim + 8 * n * n * heads),
        transcendentals=int(n * n * heads),
        bytes_accessed=int(4 * n * n + 4 * n * hc * grid[0] + 4 * n * out_dim),
    )

    out = pl.pallas_call(
        functools.partial(gat_attn_kernel, heads=heads, head_dim=head_dim,
                          concat=concat, negative_slope=NEG_SLOPE),
        grid=grid,
        in_specs=[pl.BlockSpec((td, heads), lambda i, j: (i, 0)),      # a_dst
                  pl.BlockSpec((heads, ts), lambda i, j: (0, j)),      # a_srcT
                  pl.BlockSpec((ts, hc), lambda i, j: (j, 0)),         # xp (src)
                  pl.BlockSpec((td, ts), lambda i, j: (i, j)),         # adj
                  pl.BlockSpec((1, out_dim), lambda i, j: (0, 0))],    # bias
        out_specs=pl.BlockSpec((td, out_dim), lambda i, j: (i, 0)),
        out_shape=jax.ShapeDtypeStruct((n, out_dim), jnp.float32),
        scratch_shapes=[pltpu.VMEM((td, heads), jnp.float32),   # running max
                        pltpu.VMEM((td, heads), jnp.float32),   # running denom
                        pltpu.VMEM((td, hc), jnp.float32)],     # accumulator
        compiler_params=pltpu.CompilerParams(
            dimension_semantics=("parallel", "arbitrary"),
            vmem_limit_bytes=_VMEM_LIMIT),
        cost_estimate=cost,
    )(a_dst, a_srcT, xp, adj, bias2d)
    return out


# ----------------------- pure-JAX edge-list reference ------------------------
def gat_reference(x, edge_index, w, att_src, att_dst, bias, *, heads, concat):
    n = x.shape[0]
    c = att_src.shape[1]
    xp = (x @ w).reshape(n, heads, c)
    a_src = jnp.sum(xp * att_src[None], axis=-1)    # [N, H]
    a_dst = jnp.sum(xp * att_dst[None], axis=-1)    # [N, H]
    src, dst = edge_index[0], edge_index[1]
    e = a_src[src] + a_dst[dst]                     # [E, H]
    e = jnp.where(e > 0, e, NEG_SLOPE * e)
    emax = jax.ops.segment_max(e, dst, num_segments=n)
    p = jnp.exp(e - emax[dst])
    denom = jax.ops.segment_sum(p, dst, num_segments=n)
    alpha = p / denom[dst]
    msg = alpha[:, :, None] * xp[src]               # [E, H, C]
    out = jax.ops.segment_sum(msg, dst, num_segments=n)
    out = out.reshape(n, heads * c) if concat else out.mean(axis=1)
    return out + bias


# --------------------------------- main ---------------------------------------
if __name__ == "__main__":
    # Small config consistent with the module:
    #   layer_config.dim_in = 16, layer_config.dim_out = 16,
    #   num_heads = 4, attention_concat = True  -> per-head dim = 16 // 4 = 4
    N, DIM_IN, DIM_OUT, HEADS = 16, 16, 16, 4
    CONCAT = True
    HEAD_DIM = DIM_OUT // HEADS if CONCAT else DIM_OUT

    key = jax.random.PRNGKey(0)
    kx, kw, ks, kd, kb = jax.random.split(key, 5)

    # Node features.
    x = jax.random.normal(kx, (N, DIM_IN), dtype=jnp.float32)

    # Graph: bidirectional ring; GATConv adds self loops -> include them too.
    srcs, dsts = [], []
    for i in range(N):
        srcs += [i, (i + 1) % N]
        dsts += [(i + 1) % N, i]
    for i in range(N):                      # self loops (PyG add_self_loops=True)
        srcs.append(i)
        dsts.append(i)
    edge_index = jnp.array([srcs, dsts], dtype=jnp.int32)      # [2, 48]

    # Dense adjacency mask adj[dst, src] for the kernel.
    adj = jnp.zeros((N, N), jnp.float32).at[edge_index[1], edge_index[0]].set(1.0)

    # Deterministic parameters (shapes from pyg.nn.GATConv.__init__).
    w = (jax.random.normal(kw, (DIM_IN, HEADS * HEAD_DIM), dtype=jnp.float32)
         * (1.0 / jnp.sqrt(DIM_IN)))
    att_src = jax.random.normal(ks, (HEADS, HEAD_DIM), dtype=jnp.float32) * 0.1
    att_dst = jax.random.normal(kd, (HEADS, HEAD_DIM), dtype=jnp.float32) * 0.1
    out_dim = HEADS * HEAD_DIM if CONCAT else HEAD_DIM
    bias = jax.random.normal(kb, (out_dim,), dtype=jnp.float32) * 0.1

    out = gat_conv_pallas(x, adj, w, att_src, att_dst, bias,
                          heads=HEADS, concat=CONCAT)
    out = jax.block_until_ready(out)

    ref = gat_reference(x, edge_index, w, att_src, att_dst, bias,
                        heads=HEADS, concat=CONCAT)
    assert out.shape == (N, out_dim)
    # Tolerance accounts for the approx (EUP) reciprocal in the softmax denom.
    assert jnp.allclose(out, ref, rtol=2e-3, atol=2e-3), "mismatch vs reference"

    print("KERNEL_OK")
</pallas_src>

<mosaic_0001>
module attributes {stable_mosaic.version = 11 : i64} {
  func.func @gat_project_kernel(%arg0: i32, %arg1: memref<16x16xf32, #tpu.memory_space<vmem>>, %arg2: memref<16x16xf32, #tpu.memory_space<vmem>>, %arg3: memref<16x8xf32, #tpu.memory_space<vmem>>, %arg4: memref<16x16xf32, #tpu.memory_space<vmem>>, %arg5: memref<16x8xf32, #tpu.memory_space<vmem>>) attributes {dimension_semantics = [#tpu.dimension_semantics<parallel>], iteration_bounds = array<i64: 1>, scalar_prefetch = 0 : i64, scratch_operands = 0 : i64, tpu.core_type = #tpu.core_type<tc>, window_params = [{transform_indices = @transform_0, window_bounds = array<i64: 16, 16>}, {pipeline_mode = #tpu.pipeline_mode<synchronous>, transform_indices = @transform_1, window_bounds = array<i64: 16, 16>}, {pipeline_mode = #tpu.pipeline_mode<synchronous>, transform_indices = @transform_2, window_bounds = array<i64: 16, 8>}, {transform_indices = @transform_3, window_bounds = array<i64: 16, 16>}, {transform_indices = @transform_4, window_bounds = array<i64: 16, 8>}]} {
    %c0 = arith.constant 0 : index
    %c0_0 = arith.constant 0 : index
    %0 = vector.load %arg1[%c0, %c0_0] : memref<16x16xf32, #tpu.memory_space<vmem>>, vector<16x16xf32>
    %c0_1 = arith.constant 0 : index
    %c0_2 = arith.constant 0 : index
    %1 = vector.load %arg2[%c0_1, %c0_2] : memref<16x16xf32, #tpu.memory_space<vmem>>, vector<16x16xf32>
    %cst = arith.constant dense<0.000000e+00> : vector<16x16xf32>
    %2 = tpu.matmul %0, %1, %cst {dimension_numbers = #tpu.dot_dimension_numbers<[1], [0], [0], [1], [0, 0, 1, 1], [], []>} : vector<16x16xf32>, vector<16x16xf32>, vector<16x16xf32> -> vector<16x16xf32>
    %c0_3 = arith.constant 0 : index
    %c0_4 = arith.constant 0 : index
    %3 = vector.load %arg4[%c0_3, %c0_4] : memref<16x16xf32, #tpu.memory_space<vmem>>, vector<16x16xf32>
    tpu.vector_store %arg4[%c0_3, %c0_4], %2 {strides = array<i32>} : memref<16x16xf32, #tpu.memory_space<vmem>>, vector<16x16xf32>,
    %c0_5 = arith.constant 0 : index
    %c0_6 = arith.constant 0 : index
    %4 = vector.load %arg3[%c0_5, %c0_6] : memref<16x8xf32, #tpu.memory_space<vmem>>, vector<16x8xf32>
    %cst_7 = arith.constant dense<0.000000e+00> : vector<16x8xf32>
    %5 = tpu.matmul %2, %4, %cst_7 {dimension_numbers = #tpu.dot_dimension_numbers<[1], [0], [0], [1], [0, 0, 1, 1], [], []>} : vector<16x16xf32>, vector<16x8xf32>, vector<16x8xf32> -> vector<16x8xf32>
    %c0_8 = arith.constant 0 : index
    %c0_9 = arith.constant 0 : index
    %6 = vector.load %arg5[%c0_8, %c0_9] : memref<16x8xf32, #tpu.memory_space<vmem>>, vector<16x8xf32>
    tpu.vector_store %arg5[%c0_8, %c0_9], %5 {strides = array<i32>} : memref<16x8xf32, #tpu.memory_space<vmem>>, vector<16x8xf32>,
    return
  }
  func.func @transform_0(%arg0: i32) -> (i32, i32) {
    %c0_i32 = arith.constant 0 : i32
    %c0_i32_0 = arith.constant 0 : i32
    return %arg0, %c0_i32 : i32, i32
  }
  func.func @transform_1(%arg0: i32) -> (i32, i32) {
    %c0_i32 = arith.constant 0 : i32
    %c0_i32_0 = arith.constant 0 : i32
    %c0_i32_1 = arith.constant 0 : i32
    return %c0_i32, %c0_i32_0 : i32, i32
  }
  func.func @transform_2(%arg0: i32) -> (i32, i32) {
    %c0_i32 = arith.constant 0 : i32
    %c0_i32_0 = arith.constant 0 : i32
    %c0_i32_1 = arith.constant 0 : i32
    return %c0_i32, %c0_i32_0 : i32, i32
  }
  func.func @transform_3(%arg0: i32) -> (i32, i32) {
    %c0_i32 = arith.constant 0 : i32
    %c0_i32_0 = arith.constant 0 : i32
    return %arg0, %c0_i32 : i32, i32
  }
  func.func @transform_4(%arg0: i32) -> (i32, i32) {
    %c0_i32 = arith.constant 0 : i32
    %c0_i32_0 = arith.constant 0 : i32
    return %arg0, %c0_i32 : i32, i32
  }
}

</mosaic_0001>

<bundles_post_ra>
// kernel: tpu_custom_call.1
= control target key start
LH: loop header
LB: loop body
LE: loop exit
PB: predicated region body
PF: predicated region fallthrough
CT: control target
= control target key end

     0   :  { %10 = vsyncpa [#allocation3], 0  ;;  %s395_s0 = inlined_call_operand.vmem [shape: f32[16,16], index: 0, kind: input, shape index: {}]   ;;  %s396_s1 = inlined_call_operand.hbm [shape: f32[16,16], index: 1, kind: input, shape index: {}]   ;;  %s397_s2 = inlined_call_operand.vmem [shape: f32[16,8], index: 2, kind: input, shape index: {}]   ;;  %s398_s3 = inlined_call_operand.hbm [shape: f32[16,16], index: 3, kind: output, shape index: {0}]   ;;  %s399_s4 = inlined_call_operand.vmem [shape: f32[16,8], index: 4, kind: output, shape index: {1}]  }
   0x1   :  { %11 = vsyncpa [#allocation4], 0  ;;  %s312_s15 = smov [#allocation2]   ;;  %s264_s19 = scalar_lea.hbm %s396_s1, 256 }
   0x2   :  { %s19_s16 = sshll.u32 %s312_s15, 4  ;;  %p265_p0 = scmp.ne.s32.totalorder %s396_s1, %s264_s19  ;;  %s20_s16 = int_to_ptr.vmem [resolvable:$true] %s19_s16 }
   0x3   :  { %p268_p1 = scmp.lt.u32.totalorder %s264_s19, %s396_s1 }
   0x5   :  { %p270_p2 = pnand %p268_p1, %p265_p0 }
   0x7   :  { %273 = shalt.err (!%p270_p2)
}
   0x8   :  { %s274_s24 = scalar_lea.vmem %s20_s16, 256  ;;  %p279_p4 = scmp.lt.s32.totalorder %s20_s16, %s20_s16 }
   0x9   :  { %p275_p3 = scmp.ne.s32.totalorder %s20_s16, %s274_s24  ;;  %p280_p5 = scmp.lt.s32.totalorder %s274_s24, %s274_s24 }
   0xb   :  { %p281_p6 = por %p280_p5, %p279_p4 }
   0xd   :  { %p282_p7 = pnand %p281_p6, %p275_p3 }
   0xf   :  { %285 = shalt.err (!%p282_p7)
}
  0x10   :  { %s313_s25 = smov 128   ;;  %s314_s26 = smov 8  }
  0x11   :  { %25 = dma.hbm_to_vmem [thread:$0]  %s396_s1, 256, %s20_s16, [#allocation3], %s313_s25, %s313_s25, %s314_s26  }
  0x12   :  { %308 = dma.done.wait [#allocation3], 256  }
  0x13   :  { %309 = vsyncadd [#allocation3], 4294967040  ;;  %vm35_vm0 = vcmask 130048   ;;  %v33_v0 = vld [vmem:[#allocation2] sm:$0xff]  ;;  %v34_v1 = vld [vmem:[#allocation2 + $0x8] sm:$0xff] }
  0x14   :  { %v31_v2 = vld [vmem:[%s395_s0] sm:$0xff]  ;;  %v252_v3 = vpack.c.bf16 %v34_v1, %v33_v0  ;;  %v120_v5 = vld [vmem:[%s397_s2 + $0x8] sm:$0xff] }
  0x15   :  { %242 = vmatprep.mubr.msk.f32.mxu0 %vm35_vm0, %v31_v2  ;;  %v119_v4 = vld [vmem:[%s397_s2] sm:$0xff]  ;;  %v32_v7 = vld [vmem:[%s395_s0 + $0x8] sm:$0xff]  ;;  %s315_s2 = smov [#allocation5]  }
  0x16   :  { %v256_v6 = vpack.c.bf16 %v120_v5, %v119_v4  ;;  %253 = vmatprep.subr.bf16.mxu0 %v252_v3  ;;  %s210_s10 = sshll.u32 %s315_s2, 4  ;;  %s211_s10 = int_to_ptr.vmem [resolvable:$true] %s210_s10 }
  0x17   :  { %255 = vmatpush3.bf16.msra.mxu0 %v252_v3  ;;  %s286_s11 = scalar_lea.vmem %s211_s10, 256  ;;  %p291_p9 = scmp.lt.s32.totalorder %s211_s10, %s211_s10 }
  0x18   :  { %257 = vmatprep.subr.bf16.mxu1 %v256_v6  ;;  %p287_p8 = scmp.ne.s32.totalorder %s211_s10, %s286_s11  ;;  %p292_p10 = scmp.lt.s32.totalorder %s286_s11, %s286_s11 }
  0x19   :  { %259 = vmatpush3.bf16.msra.mxu1 %v256_v6 }
  0x1a   :  { %243 = vmatmul.mubr.msk.f32.vlgmr.msra.gmra.mrb[0].mxu0 %vm35_vm0, %v32_v7  ;;  %p293_p11 = por %p292_p10, %p291_p9 }
  0x1c   :  { %p294_p12 = pnand %p293_p11, %p287_p8 }
  0xed   :  { %v244_v8 = vpop.f32.mrb[0].mxu0 }
  0xee   :  { %118 = vst.msk [vmem:[#allocation5 + $0x8] sm:$0xff] %vm35_vm0, %v244_v8  ;;  %v108_v9 = vpop.f32.mrb[1].mxu0 }
  0xef   :  { %117 = vst.msk [vmem:[#allocation5] sm:$0xff] %vm35_vm0, %v108_v9  ;;  %249 = vmatprep.mubr.msk.f32.mxu1 %vm35_vm0, %v108_v9 }
  0xf0   :  { %250 = vmatmul.mubr.msk.f32.vlgmr.msra.gmra.mrb[0].mxu1 %vm35_vm0, %v244_v8 }
  0xf1   :  { %297 = shalt.err (!%p294_p12)
}
  0xf2   :  { %s298_s13 = scalar_lea.hbm %s398_s3, 256 }
  0xf3   :  { %p299_p13 = scmp.ne.s32.totalorder %s398_s3, %s298_s13  ;;  %p302_p0 = scmp.lt.u32.totalorder %s298_s13, %s398_s3 }
  0xf5   :  { %p304_p1 = pnand %p302_p0, %p299_p13 }
  0xf7   :  { %307 = shalt.err (!%p304_p1)
}
  0xf8   :  { %216 = dma.vmem_to_hbm [thread:$0]  %s211_s10, 256, %s398_s3, [#allocation4], %s313_s25, %s313_s25, %s314_s26   ;;  %vm202_vm1 = vcmask 64512  }
 0x1c3   :  { %v251_v10 = vpop.f32.mrb[0].mxu1 }
 0x1c4   :  { %204 = vst.msk [vmem:[%s399_s4 + $0x8] sm:$0xff] %vm202_vm1, %v251_v10  ;;  %v193_v11 = vpop.f32.mrb[1].mxu1 }
 0x1c5   :  { %203 = vst.msk [vmem:[%s399_s4] sm:$0xff] %vm202_vm1, %v193_v11 }
 0x1c6   :  { %310 = dma.done.wait [#allocation4], 256  }
 0x1c7   :  { %311 = vsyncadd [#allocation4], 4294967040 }
 0x1c8   :  { %224 = vsyncpa [#allocation3], 1 }
 0x1c9   :  { %225 = vsyncpa [#allocation4], 1 }

</bundles_post_ra>
